<compile_context>
chip_gen: v7x
topology: tpu7x:2x2x1
jax: 0.10.0
libtpu: 0.0.40
codegen_flags: <defaults>
</compile_context>

<pallas_src>
import jax
import jax.numpy as jnp
from jax.experimental import pallas as pl
from jax.experimental.pallas import tpu as pltpu

# ---- model config (small, deterministic synthetic encoder) ----
VOCAB = 100
SEQ = 8
HIDDEN = 32
NUM_HEADS = 2
HEAD_DIM = HIDDEN // NUM_HEADS
FFN = 64
NUM_LABELS = 2
LN_EPS = 1e-12
MASK_NEG = 1e9
VEC_W = 128          # width of the packed bias/LN slab (lane-dense)
VEC_ROWS = 9
OUT_PAD = 128        # lane-dense padded classifier / output width


def _encoder_kernel(x_ref, mask_ref, wqkv_ref, woh_ref, w1_ref, w2_ref, wc_ref,
                    vec_ref, out_ref):
    # x_ref:    (TB, S, H) f32     mask_ref: (TB, 1, S) f32
    # wqkv_ref: (H, 3H) bf16       woh_ref:  (NH, hd, H) bf16
    # w1_ref:   (H, F) bf16        w2_ref:   (F, H) bf16
    # wc_ref:   (H, OUT_PAD) bf16  vec_ref:  (VEC_ROWS, VEC_W) f32
    # out_ref:  (TB, OUT_PAD) f32
    tb = x_ref.shape[0]
    rows = tb * SEQ

    x = x_ref[...]                                     # already f32
    x2 = x.reshape(rows, HIDDEN)                       # (rows, H)
    mask = mask_ref[...]                               # (TB, 1, S) f32
    # Additive mask, broadcast ONCE to (TB, S, S) (hoisted out of head loop).
    neg_b = jnp.broadcast_to((mask - 1.0) * MASK_NEG, (tb, SEQ, SEQ))

    vec = vec_ref[...]                                 # (VEC_ROWS, VEC_W)
    bqkv = vec[0:1, :3 * HIDDEN]
    bo   = vec[1:2, :HIDDEN]
    ln1g = vec[2:3, :HIDDEN]
    ln1b = vec[3:4, :HIDDEN]
    b1   = vec[4:5, :FFN]
    b2   = vec[5:6, :HIDDEN]
    ln2g = vec[6:7, :HIDDEN]
    ln2b = vec[7:8, :HIDDEN]
    bc   = vec[8:9, :]                                 # (1, OUT_PAD)

    # --- fused QKV projection: one MXU push, M = TB*S, N = 3H.
    # 1/sqrt(HEAD_DIM) is already folded into the Q columns at pack time.
    qkv = jnp.dot(x2.astype(jnp.bfloat16), wqkv_ref[...],
                  preferred_element_type=jnp.float32) + bqkv      # (rows, 3H)
    qkv_bf = qkv.reshape(tb, SEQ, 3 * HIDDEN).astype(jnp.bfloat16)  # cast once

    ctx = jnp.zeros((rows, HIDDEN), jnp.float32)
    for h in range(NUM_HEADS):                         # static, 2-iteration loop
        q_h = qkv_bf[:, :, h * HEAD_DIM:(h + 1) * HEAD_DIM]
        k_h = qkv_bf[:, :, HIDDEN + h * HEAD_DIM:HIDDEN + (h + 1) * HEAD_DIM]
        v_h = qkv_bf[:, :, 2 * HIDDEN + h * HEAD_DIM:2 * HIDDEN + (h + 1) * HEAD_DIM]
        scores = jnp.einsum('bqd,bkd->bqk', q_h, k_h,
                            preferred_element_type=jnp.float32) + neg_b
        m = jnp.max(scores, axis=-1, keepdims=True)
        p = jnp.exp(scores - m)
        denom = jnp.sum(p, axis=-1, keepdims=True)
        p = p * pl.reciprocal(denom, approx=True)      # EUP, not VALU divide
        o_h = jnp.einsum('bqk,bkd->bqd', p.astype(jnp.bfloat16), v_h,
                         preferred_element_type=jnp.float32)      # (TB, S, hd)
        # fold head output through its Wo slice -> no lane-axis concatenate
        ctx = ctx + jnp.dot(o_h.reshape(rows, HEAD_DIM).astype(jnp.bfloat16),
                            woh_ref[h], preferred_element_type=jnp.float32)

    attn = ctx + bo                                    # (rows, H)

    # --- residual + layernorm 1 (f32) ---
    h1 = x2 + attn
    mu = jnp.mean(h1, axis=-1, keepdims=True)
    var = jnp.mean((h1 - mu) ** 2, axis=-1, keepdims=True)
    h1 = (h1 - mu) * jax.lax.rsqrt(var + LN_EPS) * ln1g + ln1b

    # --- feed forward ---
    ff = jnp.dot(h1.astype(jnp.bfloat16), w1_ref[...],
                 preferred_element_type=jnp.float32) + b1
    ff = jax.nn.gelu(ff)
    ff = jnp.dot(ff.astype(jnp.bfloat16), w2_ref[...],
                 preferred_element_type=jnp.float32) + b2

    # --- residual + layernorm 2 (f32) ---
    h2 = h1 + ff
    mu2 = jnp.mean(h2, axis=-1, keepdims=True)
    var2 = jnp.mean((h2 - mu2) ** 2, axis=-1, keepdims=True)
    h2 = (h2 - mu2) * jax.lax.rsqrt(var2 + LN_EPS) * ln2g + ln2b   # (rows, H)

    # --- CLS pooling + classifier: one (TB, H) x (H, OUT_PAD) matmul per tile;
    # padded columns carry zero weight/bias so the store is lane-dense & exact.
    cls = h2.reshape(tb, SEQ, HIDDEN)[:, 0, :]                     # (TB, H)
    logits = jnp.dot(cls.astype(jnp.bfloat16), wc_ref[...],
                     preferred_element_type=jnp.float32) + bc      # (TB, OUT_PAD)
    out_ref[...] = logits.astype(out_ref.dtype)


def _const_spec(arr):
    """Full-array block with a constant index map (loaded once, never re-DMA'd)."""
    return pl.BlockSpec(arr.shape, lambda b, n=arr.ndim: (0,) * n)


def _choose_batch_tile(B, max_tile=512):
    """Batch tile: minimise grid steps (the grid is a serial loop costing ~0.35us
    per step).  B <= 8 -> single step.  Otherwise aim for ~2 steps (even step
    count so the 'parallel' axis shards across both v7x TensorCores; 1-2 steps
    is also near-optimal on single-TC v5e/v6e), with the tile a multiple of 8
    and capped at max_tile so per-step intermediates stay small."""
    if B <= 8:
        return B
    tb = -(-B // 2)           # ceil(B / 2)  -> 2 grid steps for moderate B
    tb = -(-tb // 8) * 8      # round up to sublane multiple
    return int(min(max_tile, tb))


def _pack_weights(params):
    """Pack per-layer tensors into a handful of kernel slabs."""
    scale = 1.0 / (float(HEAD_DIM) ** 0.5)
    # Fold the attention scale into the Q projection (exact: scale = 0.25).
    wqkv = jnp.concatenate(
        [params["wq"] * scale, params["wk"], params["wv"]], axis=1)
    bqkv = jnp.concatenate(
        [params["bq"] * scale, params["bk"], params["bv"]], axis=1)
    woh = params["wo"].reshape(NUM_HEADS, HEAD_DIM, HIDDEN)
    wc_pad = jnp.pad(params["wc"], ((0, 0), (0, OUT_PAD - NUM_LABELS)))

    def row(v):
        v = v.reshape(1, -1).astype(jnp.float32)
        return jnp.pad(v, ((0, 0), (0, VEC_W - v.shape[1])))

    vec = jnp.concatenate([
        row(bqkv), row(params["bo"]),
        row(params["ln1_g"]), row(params["ln1_b"]),
        row(params["b1"]), row(params["b2"]),
        row(params["ln2_g"]), row(params["ln2_b"]),
        row(params["bc"]),
    ], axis=0)                                                     # (VEC_ROWS, VEC_W)

    return {
        "wqkv": wqkv.astype(jnp.bfloat16),
        "woh": woh.astype(jnp.bfloat16),
        "w1": params["w1"].astype(jnp.bfloat16),
        "w2": params["w2"].astype(jnp.bfloat16),
        "wc": wc_pad.astype(jnp.bfloat16),
        "vec": vec,
    }


def encoder_logits_pallas(x_emb, attention_mask_f, packed, *, batch_tile=512):
    """x_emb: (B, S, H) f32 embedded inputs; attention_mask_f: (B, 1, S) f32."""
    B = x_emb.shape[0]
    tb = _choose_batch_tile(B, batch_tile)
    n_steps = pl.cdiv(B, tb)
    B_pad = n_steps * tb
    if B_pad != B:
        pad = B_pad - B
        x_emb = jnp.concatenate(
            [x_emb, jnp.zeros((pad, SEQ, HIDDEN), x_emb.dtype)], axis=0)
        attention_mask_f = jnp.concatenate(
            [attention_mask_f, jnp.zeros((pad, 1, SEQ), attention_mask_f.dtype)],
            axis=0)

    weight_args = [packed["wqkv"], packed["woh"], packed["w1"], packed["w2"],
                   packed["wc"], packed["vec"]]
    in_specs = [
        pl.BlockSpec((tb, SEQ, HIDDEN), lambda b: (b, 0, 0)),      # x tile
        pl.BlockSpec((tb, 1, SEQ), lambda b: (b, 0, 0)),           # mask tile
    ] + [_const_spec(w) for w in weight_args]

    out = pl.pallas_call(
        _encoder_kernel,
        out_shape=jax.ShapeDtypeStruct((B_pad, OUT_PAD), jnp.float32),
        grid_spec=pltpu.PrefetchScalarGridSpec(
            num_scalar_prefetch=0,
            grid=(n_steps,),
            in_specs=in_specs,
            out_specs=pl.BlockSpec((tb, OUT_PAD), lambda b: (b, 0)),
        ),
        compiler_params=pltpu.CompilerParams(
            dimension_semantics=("parallel",)),
    )(x_emb, attention_mask_f, *weight_args)
    return out[:B, :NUM_LABELS]                                    # (B, NUM_LABELS)


def init_params(key):
    ks = jax.random.split(key, 12)
    s = 0.02
    return {
        "word_emb": s * jax.random.normal(ks[0], (VOCAB, HIDDEN), jnp.float32),
        "pos_emb": s * jax.random.normal(ks[1], (SEQ, HIDDEN), jnp.float32),
        "wq": s * jax.random.normal(ks[2], (HIDDEN, HIDDEN), jnp.float32),
        "bq": jnp.zeros((1, HIDDEN), jnp.float32),
        "wk": s * jax.random.normal(ks[3], (HIDDEN, HIDDEN), jnp.float32),
        "bk": jnp.zeros((1, HIDDEN), jnp.float32),
        "wv": s * jax.random.normal(ks[4], (HIDDEN, HIDDEN), jnp.float32),
        "bv": jnp.zeros((1, HIDDEN), jnp.float32),
        "wo": s * jax.random.normal(ks[5], (HIDDEN, HIDDEN), jnp.float32),
        "bo": jnp.zeros((1, HIDDEN), jnp.float32),
        "ln1_g": jnp.ones((1, HIDDEN), jnp.float32),
        "ln1_b": jnp.zeros((1, HIDDEN), jnp.float32),
        "w1": s * jax.random.normal(ks[6], (HIDDEN, FFN), jnp.float32),
        "b1": jnp.zeros((1, FFN), jnp.float32),
        "w2": s * jax.random.normal(ks[7], (FFN, HIDDEN), jnp.float32),
        "b2": jnp.zeros((1, HIDDEN), jnp.float32),
        "ln2_g": jnp.ones((1, HIDDEN), jnp.float32),
        "ln2_b": jnp.zeros((1, HIDDEN), jnp.float32),
        "wc": s * jax.random.normal(ks[8], (HIDDEN, NUM_LABELS), jnp.float32),
        "bc": jnp.zeros((1, NUM_LABELS), jnp.float32),
    }


def encoder_wrapper_forward(input_ids, attention_mask, dummy_tensor, params):
    """Mirrors EncoderWrapper.forward: returns encoder(input_ids, attention_mask).logits.
    dummy_tensor is accepted and ignored (it exists only for grad checkpointing)."""
    del dummy_tensor
    # Glue outside the kernel: embedding gather + positional embedding.
    x = params["word_emb"][input_ids] + params["pos_emb"][None, :, :]    # (B, S, H)
    mask_f = attention_mask.astype(jnp.float32)[:, None, :]              # (B, 1, S)
    packed = _pack_weights(params)
    return encoder_logits_pallas(x, mask_f, packed)


# ---- pure-JAX f32 reference for correctness check ----
def _reference_forward(input_ids, attention_mask, params):
    x = params["word_emb"][input_ids] + params["pos_emb"][None, :, :]
    mask = attention_mask.astype(jnp.float32)
    neg = (mask - 1.0) * MASK_NEG                                        # (B, S)
    q = x @ params["wq"] + params["bq"]
    k = x @ params["wk"] + params["bk"]
    v = x @ params["wv"] + params["bv"]

    def split(t):  # (B, S, H) -> (B, nh, S, hd)
        B = t.shape[0]
        return t.reshape(B, SEQ, NUM_HEADS, HEAD_DIM).transpose(0, 2, 1, 3)

    qh, kh, vh = split(q), split(k), split(v)
    scores = jnp.einsum("bhqd,bhkd->bhqk", qh, kh) / (HEAD_DIM ** 0.5)
    scores = scores + neg[:, None, None, :]
    probs = jax.nn.softmax(scores, axis=-1)
    attn = jnp.einsum("bhqk,bhkd->bhqd", probs, vh)
    attn = attn.transpose(0, 2, 1, 3).reshape(x.shape[0], SEQ, HIDDEN)
    attn = attn @ params["wo"] + params["bo"]

    def ln(t, g, b):
        mu = jnp.mean(t, axis=-1, keepdims=True)
        var = jnp.mean((t - mu) ** 2, axis=-1, keepdims=True)
        return (t - mu) * jax.lax.rsqrt(var + LN_EPS) * g + b

    h1 = ln(x + attn, params["ln1_g"], params["ln1_b"])
    ff = jax.nn.gelu(h1 @ params["w1"] + params["b1"]) @ params["w2"] + params["b2"]
    h2 = ln(h1 + ff, params["ln2_g"], params["ln2_b"])
    cls = h2[:, 0, :]
    return cls @ params["wc"] + params["bc"]


if __name__ == "__main__":
    key = jax.random.PRNGKey(0)
    k_par, k_ids = jax.random.split(key)
    params = init_params(k_par)

    B = 2
    input_ids = jax.random.randint(k_ids, (B, SEQ), 0, VOCAB, dtype=jnp.int32)
    attention_mask = jnp.array(
        [[1, 1, 1, 1, 1, 1, 1, 1],
         [1, 1, 1, 1, 1, 0, 0, 0]], dtype=jnp.int32)
    dummy_tensor = jnp.ones((1,), jnp.float32)   # unused, mirrors module signature

    logits = encoder_wrapper_forward(input_ids, attention_mask, dummy_tensor, params)
    logits = jax.block_until_ready(logits)

    ref = _reference_forward(input_ids, attention_mask, params)
    assert logits.shape == (B, NUM_LABELS)
    # bf16 matmul operands + approximate reciprocal in-kernel vs f32 reference:
    # relaxed (but still tight vs the ~0.1-magnitude logits) tolerance.
    assert jnp.allclose(logits, ref, atol=5e-3, rtol=5e-2), (logits, ref)

    print("KERNEL_OK")
</pallas_src>

<mosaic_0001>
module attributes {stable_mosaic.version = 11 : i64} {
  func.func @_encoder_kernel(%arg0: i32, %arg1: memref<2x8x32xf32, #tpu.memory_space<vmem>>, %arg2: memref<2x1x8xf32, #tpu.memory_space<vmem>>, %arg3: memref<32x96xbf16, #tpu.memory_space<vmem>>, %arg4: memref<2x16x32xbf16, #tpu.memory_space<vmem>>, %arg5: memref<32x64xbf16, #tpu.memory_space<vmem>>, %arg6: memref<64x32xbf16, #tpu.memory_space<vmem>>, %arg7: memref<32x128xbf16, #tpu.memory_space<vmem>>, %arg8: memref<9x128xf32, #tpu.memory_space<vmem>>, %arg9: memref<2x128xf32, #tpu.memory_space<vmem>>) attributes {dimension_semantics = [#tpu.dimension_semantics<parallel>], iteration_bounds = array<i64: 1>, scalar_prefetch = 0 : i64, scratch_operands = 0 : i64, tpu.core_type = #tpu.core_type<tc>, window_params = [{transform_indices = @transform_0, window_bounds = array<i64: 2, 8, 32>}, {transform_indices = @transform_1, window_bounds = array<i64: 2, 1, 8>}, {pipeline_mode = #tpu.pipeline_mode<synchronous>, transform_indices = @transform_2, window_bounds = array<i64: 32, 96>}, {pipeline_mode = #tpu.pipeline_mode<synchronous>, transform_indices = @transform_3, window_bounds = array<i64: 2, 16, 32>}, {pipeline_mode = #tpu.pipeline_mode<synchronous>, transform_indices = @transform_4, window_bounds = array<i64: 32, 64>}, {pipeline_mode = #tpu.pipeline_mode<synchronous>, transform_indices = @transform_5, window_bounds = array<i64: 64, 32>}, {pipeline_mode = #tpu.pipeline_mode<synchronous>, transform_indices = @transform_6, window_bounds = array<i64: 32, 128>}, {pipeline_mode = #tpu.pipeline_mode<synchronous>, transform_indices = @transform_7, window_bounds = array<i64: 9, 128>}, {transform_indices = @transform_8, window_bounds = array<i64: 2, 128>}]} {
    %c0 = arith.constant 0 : index
    %c0_0 = arith.constant 0 : index
    %c0_1 = arith.constant 0 : index
    %0 = vector.load %arg1[%c0, %c0_0, %c0_1] : memref<2x8x32xf32, #tpu.memory_space<vmem>>, vector<2x8x32xf32>
    %1 = vector.shape_cast %0 : vector<2x8x32xf32> to vector<16x32xf32>
    %c0_2 = arith.constant 0 : index
    %c0_3 = arith.constant 0 : index
    %c0_4 = arith.constant 0 : index
    %2 = vector.load %arg2[%c0_2, %c0_3, %c0_4] : memref<2x1x8xf32, #tpu.memory_space<vmem>>, vector<2x1x8xf32>
    %cst = arith.constant 1.000000e+00 : f32
    %3 = vector.broadcast %cst : f32 to vector<2x1x8xf32>
    %4 = arith.subf %2, %3 : vector<2x1x8xf32>
    %cst_5 = arith.constant 1.000000e+09 : f32
    %5 = vector.broadcast %cst_5 : f32 to vector<2x1x8xf32>
    %6 = arith.mulf %4, %5 : vector<2x1x8xf32>
    %7 = vector.shape_cast %6 : vector<2x1x8xf32> to vector<2x1x8xf32>
    %8 = vector.broadcast %7 : vector<2x1x8xf32> to vector<2x8x8xf32>
    %c0_6 = arith.constant 0 : index
    %c0_7 = arith.constant 0 : index
    %9 = vector.load %arg8[%c0_6, %c0_7] : memref<9x128xf32, #tpu.memory_space<vmem>>, vector<9x128xf32>
    %10 = vector.extract_strided_slice %9 {offsets = [0, 0], sizes = [1, 96], strides = [1, 1]} : vector<9x128xf32> to vector<1x96xf32>
    %11 = vector.extract_strided_slice %9 {offsets = [1, 0], sizes = [1, 32], strides = [1, 1]} : vector<9x128xf32> to vector<1x32xf32>
    %12 = vector.extract_strided_slice %9 {offsets = [2, 0], sizes = [1, 32], strides = [1, 1]} : vector<9x128xf32> to vector<1x32xf32>
    %13 = vector.extract_strided_slice %9 {offsets = [3, 0], sizes = [1, 32], strides = [1, 1]} : vector<9x128xf32> to vector<1x32xf32>
    %14 = vector.extract_strided_slice %9 {offsets = [4, 0], sizes = [1, 64], strides = [1, 1]} : vector<9x128xf32> to vector<1x64xf32>
    %15 = vector.extract_strided_slice %9 {offsets = [5, 0], sizes = [1, 32], strides = [1, 1]} : vector<9x128xf32> to vector<1x32xf32>
    %16 = vector.extract_strided_slice %9 {offsets = [6, 0], sizes = [1, 32], strides = [1, 1]} : vector<9x128xf32> to vector<1x32xf32>
    %17 = vector.extract_strided_slice %9 {offsets = [7, 0], sizes = [1, 32], strides = [1, 1]} : vector<9x128xf32> to vector<1x32xf32>
    %18 = vector.extract_strided_slice %9 {offsets = [8, 0], sizes = [1, 128], strides = [1, 1]} : vector<9x128xf32> to vector<1x128xf32>
    %19 = arith.truncf %1 : vector<16x32xf32> to vector<16x32xbf16>
    %c0_8 = arith.constant 0 : index
    %c0_9 = arith.constant 0 : index
    %20 = vector.load %arg3[%c0_8, %c0_9] : memref<32x96xbf16, #tpu.memory_space<vmem>>, vector<32x96xbf16>
    %cst_10 = arith.constant dense<0.000000e+00> : vector<16x96xf32>
    %21 = tpu.matmul %19, %20, %cst_10 {dimension_numbers = #tpu.dot_dimension_numbers<[1], [0], [0], [1], [0, 0, 1, 1], [], []>} : vector<16x32xbf16>, vector<32x96xbf16>, vector<16x96xf32> -> vector<16x96xf32>
    %22 = vector.broadcast %10 : vector<1x96xf32> to vector<16x96xf32>
    %23 = arith.addf %21, %22 : vector<16x96xf32>
    %24 = vector.shape_cast %23 : vector<16x96xf32> to vector<2x8x96xf32>
    %25 = arith.truncf %24 : vector<2x8x96xf32> to vector<2x8x96xbf16>
    %cst_11 = arith.constant 0.000000e+00 : f32
    %26 = vector.broadcast %cst_11 : f32 to vector<16x32xf32>
    %27 = vector.extract_strided_slice %25 {offsets = [0, 0, 0], sizes = [2, 8, 16], strides = [1, 1, 1]} : vector<2x8x96xbf16> to vector<2x8x16xbf16>
    %28 = vector.extract_strided_slice %25 {offsets = [0, 0, 32], sizes = [2, 8, 16], strides = [1, 1, 1]} : vector<2x8x96xbf16> to vector<2x8x16xbf16>
    %29 = vector.extract_strided_slice %25 {offsets = [0, 0, 64], sizes = [2, 8, 16], strides = [1, 1, 1]} : vector<2x8x96xbf16> to vector<2x8x16xbf16>
    "tpu.trace_start"() <{level = 10 : i32, message = "bqd,bkd->bqk"}> : () -> ()
    %cst_12 = arith.constant dense<0.000000e+00> : vector<2x8x8xf32>
    %30 = tpu.matmul %27, %28, %cst_12 {dimension_numbers = #tpu.dot_dimension_numbers<[2], [2], [1], [1], [0, 0, 0, 1, 1, 1], [0], [0]>} : vector<2x8x16xbf16>, vector<2x8x16xbf16>, vector<2x8x8xf32> -> vector<2x8x8xf32>
    "tpu.trace_stop"() : () -> ()
    %31 = arith.addf %30, %8 : vector<2x8x8xf32>
    %cst_13 = arith.constant dense<0xFF800000> : vector<2x8xf32>
    %32 = vector.multi_reduction <maximumf>, %31, %cst_13 [2] : vector<2x8x8xf32> to vector<2x8xf32>
    %33 = vector.shape_cast %32 : vector<2x8xf32> to vector<2x8x1xf32>
    %34 = vector.broadcast %33 : vector<2x8x1xf32> to vector<2x8x8xf32>
    %35 = arith.subf %31, %34 : vector<2x8x8xf32>
    %36 = math.exp %35 : vector<2x8x8xf32>
    %cst_14 = arith.constant dense<0.000000e+00> : vector<2x8xf32>
    %37 = vector.multi_reduction <add>, %36, %cst_14 [2] : vector<2x8x8xf32> to vector<2x8xf32>
    %38 = vector.shape_cast %37 : vector<2x8xf32> to vector<2x8x1xf32>
    %39 = tpu.reciprocal %38 {approx = true} : vector<2x8x1xf32> -> vector<2x8x1xf32>
    %40 = vector.broadcast %39 : vector<2x8x1xf32> to vector<2x8x8xf32>
    %41 = arith.mulf %36, %40 : vector<2x8x8xf32>
    %42 = arith.truncf %41 : vector<2x8x8xf32> to vector<2x8x8xbf16>
    "tpu.trace_start"() <{level = 10 : i32, message = "bqk,bkd->bqd"}> : () -> ()
    %cst_15 = arith.constant dense<0.000000e+00> : vector<2x8x16xf32>
    %43 = tpu.matmul %42, %29, %cst_15 {dimension_numbers = #tpu.dot_dimension_numbers<[2], [1], [1], [2], [0, 0, 0, 1, 1, 2], [0], [0]>} : vector<2x8x8xbf16>, vector<2x8x16xbf16>, vector<2x8x16xf32> -> vector<2x8x16xf32>
    "tpu.trace_stop"() : () -> ()
    %44 = vector.shape_cast %43 : vector<2x8x16xf32> to vector<16x16xf32>
    %45 = arith.truncf %44 : vector<16x16xf32> to vector<16x16xbf16>
    %c0_16 = arith.constant 0 : index
    %c0_17 = arith.constant 0 : index
    %c0_18 = arith.constant 0 : index
    %46 = vector.load %arg4[%c0_16, %c0_17, %c0_18] : memref<2x16x32xbf16, #tpu.memory_space<vmem>>, vector<1x16x32xbf16>
    %47 = vector.shape_cast %46 : vector<1x16x32xbf16> to vector<16x32xbf16>
    %cst_19 = arith.constant dense<0.000000e+00> : vector<16x32xf32>
    %48 = tpu.matmul %45, %47, %cst_19 {dimension_numbers = #tpu.dot_dimension_numbers<[1], [0], [0], [1], [0, 0, 1, 1], [], []>} : vector<16x16xbf16>, vector<16x32xbf16>, vector<16x32xf32> -> vector<16x32xf32>
    %49 = arith.addf %26, %48 : vector<16x32xf32>
    %50 = vector.extract_strided_slice %25 {offsets = [0, 0, 16], sizes = [2, 8, 16], strides = [1, 1, 1]} : vector<2x8x96xbf16> to vector<2x8x16xbf16>
    %51 = vector.extract_strided_slice %25 {offsets = [0, 0, 48], sizes = [2, 8, 16], strides = [1, 1, 1]} : vector<2x8x96xbf16> to vector<2x8x16xbf16>
    %52 = vector.extract_strided_slice %25 {offsets = [0, 0, 80], sizes = [2, 8, 16], strides = [1, 1, 1]} : vector<2x8x96xbf16> to vector<2x8x16xbf16>
    "tpu.trace_start"() <{level = 10 : i32, message = "bqd,bkd->bqk"}> : () -> ()
    %cst_20 = arith.constant dense<0.000000e+00> : vector<2x8x8xf32>
    %53 = tpu.matmul %50, %51, %cst_20 {dimension_numbers = #tpu.dot_dimension_numbers<[2], [2], [1], [1], [0, 0, 0, 1, 1, 1], [0], [0]>} : vector<2x8x16xbf16>, vector<2x8x16xbf16>, vector<2x8x8xf32> -> vector<2x8x8xf32>
    "tpu.trace_stop"() : () -> ()
    %54 = arith.addf %53, %8 : vector<2x8x8xf32>
    %cst_21 = arith.constant dense<0xFF800000> : vector<2x8xf32>
    %55 = vector.multi_reduction <maximumf>, %54, %cst_21 [2] : vector<2x8x8xf32> to vector<2x8xf32>
    %56 = vector.shape_cast %55 : vector<2x8xf32> to vector<2x8x1xf32>
    %57 = vector.broadcast %56 : vector<2x8x1xf32> to vector<2x8x8xf32>
    %58 = arith.subf %54, %57 : vector<2x8x8xf32>
    %59 = math.exp %58 : vector<2x8x8xf32>
    %cst_22 = arith.constant dense<0.000000e+00> : vector<2x8xf32>
    %60 = vector.multi_reduction <add>, %59, %cst_22 [2] : vector<2x8x8xf32> to vector<2x8xf32>
    %61 = vector.shape_cast %60 : vector<2x8xf32> to vector<2x8x1xf32>
    %62 = tpu.reciprocal %61 {approx = true} : vector<2x8x1xf32> -> vector<2x8x1xf32>
    %63 = vector.broadcast %62 : vector<2x8x1xf32> to vector<2x8x8xf32>
    %64 = arith.mulf %59, %63 : vector<2x8x8xf32>
    %65 = arith.truncf %64 : vector<2x8x8xf32> to vector<2x8x8xbf16>
    "tpu.trace_start"() <{level = 10 : i32, message = "bqk,bkd->bqd"}> : () -> ()
    %cst_23 = arith.constant dense<0.000000e+00> : vector<2x8x16xf32>
    %66 = tpu.matmul %65, %52, %cst_23 {dimension_numbers = #tpu.dot_dimension_numbers<[2], [1], [1], [2], [0, 0, 0, 1, 1, 2], [0], [0]>} : vector<2x8x8xbf16>, vector<2x8x16xbf16>, vector<2x8x16xf32> -> vector<2x8x16xf32>
    "tpu.trace_stop"() : () -> ()
    %67 = vector.shape_cast %66 : vector<2x8x16xf32> to vector<16x16xf32>
    %68 = arith.truncf %67 : vector<16x16xf32> to vector<16x16xbf16>
    %c1 = arith.constant 1 : index
    %c0_24 = arith.constant 0 : index
    %c0_25 = arith.constant 0 : index
    %69 = vector.load %arg4[%c1, %c0_24, %c0_25] : memref<2x16x32xbf16, #tpu.memory_space<vmem>>, vector<1x16x32xbf16>
    %70 = vector.shape_cast %69 : vector<1x16x32xbf16> to vector<16x32xbf16>
    %cst_26 = arith.constant dense<0.000000e+00> : vector<16x32xf32>
    %71 = tpu.matmul %68, %70, %cst_26 {dimension_numbers = #tpu.dot_dimension_numbers<[1], [0], [0], [1], [0, 0, 1, 1], [], []>} : vector<16x16xbf16>, vector<16x32xbf16>, vector<16x32xf32> -> vector<16x32xf32>
    %72 = arith.addf %49, %71 : vector<16x32xf32>
    %73 = vector.broadcast %11 : vector<1x32xf32> to vector<16x32xf32>
    %74 = arith.addf %72, %73 : vector<16x32xf32>
    %75 = arith.addf %1, %74 : vector<16x32xf32>
    %cst_27 = arith.constant dense<0.000000e+00> : vector<16xf32>
    %76 = vector.multi_reduction <add>, %75, %cst_27 [1] : vector<16x32xf32> to vector<16xf32>
    %77 = vector.shape_cast %76 : vector<16xf32> to vector<16x1xf32>
    %cst_28 = arith.constant 3.200000e+01 : f32
    %78 = vector.broadcast %cst_28 : f32 to vector<16x1xf32>
    %79 = arith.divf %77, %78 : vector<16x1xf32>
    %80 = vector.broadcast %79 : vector<16x1xf32> to vector<16x32xf32>
    %81 = arith.subf %75, %80 : vector<16x32xf32>
    %82 = arith.mulf %81, %81 : vector<16x32xf32>
    %cst_29 = arith.constant dense<0.000000e+00> : vector<16xf32>
    %83 = vector.multi_reduction <add>, %82, %cst_29 [1] : vector<16x32xf32> to vector<16xf32>
    %84 = vector.shape_cast %83 : vector<16xf32> to vector<16x1xf32>
    %cst_30 = arith.constant 3.200000e+01 : f32
    %85 = vector.broadcast %cst_30 : f32 to vector<16x1xf32>
    %86 = arith.divf %84, %85 : vector<16x1xf32>
    %87 = vector.broadcast %79 : vector<16x1xf32> to vector<16x32xf32>
    %88 = arith.subf %75, %87 : vector<16x32xf32>
    %cst_31 = arith.constant 9.99999996E-13 : f32
    %89 = vector.broadcast %cst_31 : f32 to vector<16x1xf32>
    %90 = arith.addf %86, %89 : vector<16x1xf32>
    %91 = math.rsqrt %90 : vector<16x1xf32>
    %92 = vector.broadcast %91 : vector<16x1xf32> to vector<16x32xf32>
    %93 = arith.mulf %88, %92 : vector<16x32xf32>
    %94 = vector.broadcast %12 : vector<1x32xf32> to vector<16x32xf32>
    %95 = arith.mulf %93, %94 : vector<16x32xf32>
    %96 = vector.broadcast %13 : vector<1x32xf32> to vector<16x32xf32>
    %97 = arith.addf %95, %96 : vector<16x32xf32>
    %98 = arith.truncf %97 : vector<16x32xf32> to vector<16x32xbf16>
    %c0_32 = arith.constant 0 : index
    %c0_33 = arith.constant 0 : index
    %99 = vector.load %arg5[%c0_32, %c0_33] : memref<32x64xbf16, #tpu.memory_space<vmem>>, vector<32x64xbf16>
    %cst_34 = arith.constant dense<0.000000e+00> : vector<16x64xf32>
    %100 = tpu.matmul %98, %99, %cst_34 {dimension_numbers = #tpu.dot_dimension_numbers<[1], [0], [0], [1], [0, 0, 1, 1], [], []>} : vector<16x32xbf16>, vector<32x64xbf16>, vector<16x64xf32> -> vector<16x64xf32>
    %101 = vector.broadcast %14 : vector<1x64xf32> to vector<16x64xf32>
    %102 = arith.addf %100, %101 : vector<16x64xf32>
    %103 = arith.mulf %102, %102 : vector<16x64xf32>
    %104 = arith.mulf %102, %103 : vector<16x64xf32>
    %cst_35 = arith.constant 4.471500e-02 : f32
    %105 = vector.broadcast %cst_35 : f32 to vector<16x64xf32>
    %106 = arith.mulf %105, %104 : vector<16x64xf32>
    %107 = arith.addf %102, %106 : vector<16x64xf32>
    %cst_36 = arith.constant 0.797884583 : f32
    %108 = vector.broadcast %cst_36 : f32 to vector<16x64xf32>
    %109 = arith.mulf %108, %107 : vector<16x64xf32>
    %110 = math.tanh %109 : vector<16x64xf32>
    %cst_37 = arith.constant 1.000000e+00 : f32
    %111 = vector.broadcast %cst_37 : f32 to vector<16x64xf32>
    %112 = arith.addf %111, %110 : vector<16x64xf32>
    %cst_38 = arith.constant 5.000000e-01 : f32
    %113 = vector.broadcast %cst_38 : f32 to vector<16x64xf32>
    %114 = arith.mulf %113, %112 : vector<16x64xf32>
    %115 = arith.mulf %102, %114 : vector<16x64xf32>
    %116 = arith.truncf %115 : vector<16x64xf32> to vector<16x64xbf16>
    %c0_39 = arith.constant 0 : index
    %c0_40 = arith.constant 0 : index
    %117 = vector.load %arg6[%c0_39, %c0_40] : memref<64x32xbf16, #tpu.memory_space<vmem>>, vector<64x32xbf16>
    %cst_41 = arith.constant dense<0.000000e+00> : vector<16x32xf32>
    %118 = tpu.matmul %116, %117, %cst_41 {dimension_numbers = #tpu.dot_dimension_numbers<[1], [0], [0], [1], [0, 0, 1, 1], [], []>} : vector<16x64xbf16>, vector<64x32xbf16>, vector<16x32xf32> -> vector<16x32xf32>
    %119 = vector.broadcast %15 : vector<1x32xf32> to vector<16x32xf32>
    %120 = arith.addf %118, %119 : vector<16x32xf32>
    %121 = arith.addf %97, %120 : vector<16x32xf32>
    %cst_42 = arith.constant dense<0.000000e+00> : vector<16xf32>
    %122 = vector.multi_reduction <add>, %121, %cst_42 [1] : vector<16x32xf32> to vector<16xf32>
    %123 = vector.shape_cast %122 : vector<16xf32> to vector<16x1xf32>
    %cst_43 = arith.constant 3.200000e+01 : f32
    %124 = vector.broadcast %cst_43 : f32 to vector<16x1xf32>
    %125 = arith.divf %123, %124 : vector<16x1xf32>
    %126 = vector.broadcast %125 : vector<16x1xf32> to vector<16x32xf32>
    %127 = arith.subf %121, %126 : vector<16x32xf32>
    %128 = arith.mulf %127, %127 : vector<16x32xf32>
    %cst_44 = arith.constant dense<0.000000e+00> : vector<16xf32>
    %129 = vector.multi_reduction <add>, %128, %cst_44 [1] : vector<16x32xf32> to vector<16xf32>
    %130 = vector.shape_cast %129 : vector<16xf32> to vector<16x1xf32>
    %cst_45 = arith.constant 3.200000e+01 : f32
    %131 = vector.broadcast %cst_45 : f32 to vector<16x1xf32>
    %132 = arith.divf %130, %131 : vector<16x1xf32>
    %133 = vector.broadcast %125 : vector<16x1xf32> to vector<16x32xf32>
    %134 = arith.subf %121, %133 : vector<16x32xf32>
    %cst_46 = arith.constant 9.99999996E-13 : f32
    %135 = vector.broadcast %cst_46 : f32 to vector<16x1xf32>
    %136 = arith.addf %132, %135 : vector<16x1xf32>
    %137 = math.rsqrt %136 : vector<16x1xf32>
    %138 = vector.broadcast %137 : vector<16x1xf32> to vector<16x32xf32>
    %139 = arith.mulf %134, %138 : vector<16x32xf32>
    %140 = vector.broadcast %16 : vector<1x32xf32> to vector<16x32xf32>
    %141 = arith.mulf %139, %140 : vector<16x32xf32>
    %142 = vector.broadcast %17 : vector<1x32xf32> to vector<16x32xf32>
    %143 = arith.addf %141, %142 : vector<16x32xf32>
    %144 = vector.shape_cast %143 : vector<16x32xf32> to vector<2x8x32xf32>
    %145 = vector.extract_strided_slice %144 {offsets = [0, 0, 0], sizes = [2, 1, 32], strides = [1, 1, 1]} : vector<2x8x32xf32> to vector<2x1x32xf32>
    %146 = vector.shape_cast %145 : vector<2x1x32xf32> to vector<2x32xf32>
    %147 = arith.truncf %146 : vector<2x32xf32> to vector<2x32xbf16>
    %c0_47 = arith.constant 0 : index
    %c0_48 = arith.constant 0 : index
    %148 = vector.load %arg7[%c0_47, %c0_48] : memref<32x128xbf16, #tpu.memory_space<vmem>>, vector<32x128xbf16>
    %cst_49 = arith.constant dense<0.000000e+00> : vector<2x128xf32>
    %149 = tpu.matmul %147, %148, %cst_49 {dimension_numbers = #tpu.dot_dimension_numbers<[1], [0], [0], [1], [0, 0, 1, 1], [], []>} : vector<2x32xbf16>, vector<32x128xbf16>, vector<2x128xf32> -> vector<2x128xf32>
    %150 = vector.broadcast %18 : vector<1x128xf32> to vector<2x128xf32>
    %151 = arith.addf %149, %150 : vector<2x128xf32>
    %c0_50 = arith.constant 0 : index
    %c0_51 = arith.constant 0 : index
    %152 = vector.load %arg9[%c0_50, %c0_51] : memref<2x128xf32, #tpu.memory_space<vmem>>, vector<2x128xf32>
    tpu.vector_store %arg9[%c0_50, %c0_51], %151 {strides = array<i32>} : memref<2x128xf32, #tpu.memory_space<vmem>>, vector<2x128xf32>,
    return
  }
  func.func @transform_0(%arg0: i32) -> (i32, i32, i32) {
    %c0_i32 = arith.constant 0 : i32
    %c0_i32_0 = arith.constant 0 : i32
    %c0_i32_1 = arith.constant 0 : i32
    return %arg0, %c0_i32, %c0_i32_0 : i32, i32, i32
  }
  func.func @transform_1(%arg0: i32) -> (i32, i32, i32) {
    %c0_i32 = arith.constant 0 : i32
    %c0_i32_0 = arith.constant 0 : i32
    %c0_i32_1 = arith.constant 0 : i32
    return %arg0, %c0_i32, %c0_i32_0 : i32, i32, i32
  }
  func.func @transform_2(%arg0: i32) -> (i32, i32) {
    %c0_i32 = arith.constant 0 : i32
    %c0_i32_0 = arith.constant 0 : i32
    %c0_i32_1 = arith.constant 0 : i32
    return %c0_i32, %c0_i32_0 : i32, i32
  }
  func.func @transform_3(%arg0: i32) -> (i32, i32, i32) {
    %c0_i32 = arith.constant 0 : i32
    %c0_i32_0 = arith.constant 0 : i32
    %c0_i32_1 = arith.constant 0 : i32
    %c0_i32_2 = arith.constant 0 : i32
    return %c0_i32, %c0_i32_0, %c0_i32_1 : i32, i32, i32
  }
  func.func @transform_4(%arg0: i32) -> (i32, i32) {
    %c0_i32 = arith.constant 0 : i32
    %c0_i32_0 = arith.constant 0 : i32
    %c0_i32_1 = arith.constant 0 : i32
    return %c0_i32, %c0_i32_0 : i32, i32
  }
  func.func @transform_5(%arg0: i32) -> (i32, i32) {
    %c0_i32 = arith.constant 0 : i32
    %c0_i32_0 = arith.constant 0 : i32
    %c0_i32_1 = arith.constant 0 : i32
    return %c0_i32, %c0_i32_0 : i32, i32
  }
  func.func @transform_6(%arg0: i32) -> (i32, i32) {
    %c0_i32 = arith.constant 0 : i32
    %c0_i32_0 = arith.constant 0 : i32
    %c0_i32_1 = arith.constant 0 : i32
    return %c0_i32, %c0_i32_0 : i32, i32
  }
  func.func @transform_7(%arg0: i32) -> (i32, i32) {
    %c0_i32 = arith.constant 0 : i32
    %c0_i32_0 = arith.constant 0 : i32
    %c0_i32_1 = arith.constant 0 : i32
    return %c0_i32, %c0_i32_0 : i32, i32
  }
  func.func @transform_8(%arg0: i32) -> (i32, i32) {
    %c0_i32 = arith.constant 0 : i32
    %c0_i32_0 = arith.constant 0 : i32
    return %arg0, %c0_i32 : i32, i32
  }
}

</mosaic_0001>

<bundles_post_ra>
// kernel: tpu_custom_call.1
= control target key start
LH: loop header
LB: loop body
LE: loop exit
PB: predicated region body
PF: predicated region fallthrough
CT: control target
= control target key end

     0   :  { %13 = vsyncpa [#allocation3], 0  ;;  %s1657_s0 = inlined_call_operand.vmem [shape: f32[2,8,32], index: 0, kind: input, shape index: {}]   ;;  %s1658_s1 = inlined_call_operand.vmem [shape: f32[2,1,8], index: 1, kind: input, shape index: {}]   ;;  %s1659_s2 = inlined_call_operand.vmem [shape: bf16[32,96], index: 2, kind: input, shape index: {}]   ;;  %s1660_s3 = inlined_call_operand.vmem [shape: bf16[2,16,32], index: 3, kind: input, shape index: {}]   ;;  %s1661_s4 = inlined_call_operand.hbm [shape: bf16[32,64], index: 4, kind: input, shape index: {}]   ;;  %s1662_s5 = inlined_call_operand.vmem [shape: bf16[64,32], index: 5, kind: input, shape index: {}]   ;;  %s1663_s6 = inlined_call_operand.hbm [shape: bf16[32,128], index: 6, kind: input, shape index: {}]   ;;  %s1664_s7 = inlined_call_operand.hbm [shape: f32[9,128], index: 7, kind: input, shape index: {}]   ;;  %s1665_s8 = inlined_call_operand.hbm [shape: f32[2,128], index: 8, kind: output, shape index: {}]  }
   0x1   :  { %14 = vsyncpa [#allocation6], 0 }
   0x2   :  { %15 = vsyncpa [#allocation4], 0  ;;  %s1361_s27 = smov [#allocation5]   ;;  %s1362_s29 = smov [#allocation2]  }
   0x3   :  { %s43_s28 = sshll.u32 %s1361_s27, 4  ;;  %s29_s30 = sshll.u32 %s1362_s29, 4  ;;  %s44_s28 = int_to_ptr.vmem [resolvable:$true] %s43_s28  ;;  %s1420_s30 = int_to_ptr.vmem [resolvable:$true] %s29_s30 }
   0x4   :  { %s1267_s11 = scalar_lea.hbm %s1663_s6, 256 }
   0x5   :  { %p1268_p0 = scmp.ne.s32.totalorder %s1663_s6, %s1267_s11  ;;  %p1271_p1 = scmp.lt.u32.totalorder %s1267_s11, %s1663_s6 }
   0x7   :  { %p1273_p2 = pnand %p1271_p1, %p1268_p0 }
   0x9   :  { %1276 = shalt.err (!%p1273_p2)
}
   0xa   :  { %s1277_s16 = scalar_lea.vmem %s44_s28, 256  ;;  %p1282_p4 = scmp.lt.s32.totalorder %s44_s28, %s44_s28 }
   0xb   :  { %p1278_p3 = scmp.ne.s32.totalorder %s44_s28, %s1277_s16  ;;  %p1283_p5 = scmp.lt.s32.totalorder %s1277_s16, %s1277_s16 }
   0xd   :  { %p1284_p6 = por %p1283_p5, %p1282_p4 }
   0xf   :  { %p1285_p7 = pnand %p1284_p6, %p1278_p3 }
  0x11   :  { %1288 = shalt.err (!%p1285_p7)
}
  0x12   :  { %s1363_s17 = smov 64   ;;  %s1364_s18 = smov 4  }
  0x13   :  { %49 = dma.hbm_to_vmem [thread:$0]  %s1663_s6, 256, %s44_s28, [#allocation6], %s1363_s17, %s1363_s17, %s1364_s18  }
  0x14   :  { %s1289_s23 = scalar_lea.hbm %s1661_s4, 256 }
  0x15   :  { %p1290_p8 = scmp.ne.s32.totalorder %s1661_s4, %s1289_s23  ;;  %p1293_p9 = scmp.lt.u32.totalorder %s1289_s23, %s1661_s4 }
  0x17   :  { %p1295_p10 = pnand %p1293_p9, %p1290_p8 }
  0x19   :  { %1298 = shalt.err (!%p1295_p10)
}
  0x1a   :  { %s1299_s29 = scalar_lea.vmem %s1420_s30, 256  ;;  %p1304_p12 = scmp.lt.s32.totalorder %s1420_s30, %s1420_s30 }
  0x1b   :  { %p1300_p11 = scmp.ne.s32.totalorder %s1420_s30, %s1299_s29  ;;  %p1305_p13 = scmp.lt.s32.totalorder %s1299_s29, %s1299_s29 }
  0x1d   :  { %p1306_p0 = por %p1305_p13, %p1304_p12 }
  0x1f   :  { %p1307_p1 = pnand %p1306_p0, %p1300_p11 }
  0x21   :  { %1310 = shalt.err (!%p1307_p1)
}
  0x22   :  { %35 = dma.hbm_to_vmem [thread:$0]  %s1661_s4, 256, %s1420_s30, [#allocation3], %s1363_s17, %s1363_s17, %s1364_s18  }
  0x23   :  { %s1365_s9 = smov [#allocation7]   ;;  %s1311_s13 = scalar_lea.hbm %s1664_s7, 256 }
  0x24   :  { %s55_s10 = sshll.u32 %s1365_s9, 4  ;;  %p1312_p2 = scmp.ne.s32.totalorder %s1664_s7, %s1311_s13  ;;  %s56_s10 = int_to_ptr.vmem [resolvable:$true] %s55_s10 }
  0x25   :  { %p1315_p3 = scmp.lt.u32.totalorder %s1311_s13, %s1664_s7 }
  0x27   :  { %p1317_p4 = pnand %p1315_p3, %p1312_p2 }
  0x29   :  { %1320 = shalt.err (!%p1317_p4)
}
  0x2a   :  { %s1321_s20 = scalar_lea.vmem %s56_s10, 256  ;;  %p1326_p6 = scmp.lt.s32.totalorder %s56_s10, %s56_s10 }
  0x2b   :  { %p1322_p5 = scmp.ne.s32.totalorder %s56_s10, %s1321_s20  ;;  %p1327_p7 = scmp.lt.s32.totalorder %s1321_s20, %s1321_s20 }
  0x2d   :  { %p1328_p8 = por %p1327_p7, %p1326_p6 }
  0x2f   :  { %p1329_p9 = pnand %p1328_p8, %p1322_p5 }
  0x31   :  { %1332 = shalt.err (!%p1329_p9)
}
  0x32   :  { %s1366_s4 = smov 128   ;;  %s1367_s30 = smov 8  }
  0x33   :  { %61 = dma.hbm_to_vmem [thread:$0]  %s1664_s7, 256, %s56_s10, [#allocation6], %s1366_s4, %s1366_s4, %s1367_s30  }
  0x34   :  { %1355 = dma.done.wait [#allocation3], 256  }
  0x35   :  { %1356 = vsyncadd [#allocation3], 4294967040 }
  0x36   :  { %1357 = dma.done.wait [#allocation6], 512  }
  0x37   :  { %1358 = vsyncadd [#allocation6], 4294966784  ;;  %v1368_v0 = vmov 0.0   ;;  %vm1369_vm0 = vmmov 0   ;;  %v1227_v1 = vld [vmem:[%s1659_s2] sm:$0xff]   ;;  %v1228_v2 = vld [vmem:[%s1659_s2 + $0x8] sm:$0xff]   ;;  %v82_v6 = vlaneseq }
  0x38   :  { %1117 = vmatprep.subr.bf16.mxu0 %v1368_v0  ;;  %1121 = vmatprep.mubr.msk.bf16.mxu0 %vm1369_vm0, %v1368_v0  ;;  %v1482_v3 = vld [vmem:[%s1657_s0] sm:$0xff]  ;;  %v1487_v4 = vld [vmem:[%s1657_s0 + $0x8] sm:$0xff]  ;;  %vm115_vm1 = vcmask 261120   ;;  %s1370_s0 = smov 96   ;;  %vm165_vm2 = vcmask 130048   ;;  %vm261_vm3 = vcmask 64512  }
  0x39   :  { %1125 = vmatprep.subr.bf16.mxu1 %v1368_v0  ;;  %1127 = vmatprep.mubr.msk.bf16.mxu1 %vm1369_vm0, %v1368_v0  ;;  %v94_v5 = vpack.c.bf16 %v1487_v4, %v1482_v3  ;;  %v1496_v7 = vshrl.u32 %v82_v6, 7  ;;  %v1499_v9 = vld [vmem:[#allocation7] sm:$0xff]  ;;  %vm291_vm4 = vcmask 1043456   ;;  %s1373_s10 = smov 48   ;;  %vm877_vm5 = vcmask 523264  }
  0x3a   :  { %1118 = vmatpush3.bf16.msra.mxu0 %v1227_v1  ;;  %v74_v23 = vld [vmem:[%s1658_s1] sm:$0x1]  ;;  %v75_v25 = vld [vmem:[%s1658_s1 + $0x1] sm:$0x1]  ;;  %s1371_s1 = smov 80   ;;  %vm977_vm6 = vcmask 1041409  }
  0x3b   :  { %1119 = vmatprep.subr.bf16.mxu0 %v1368_v0  ;;  %v84_v8 = vsub.s32 0, %v1496_v7  ;;  %v1052_v24 = vadd.f32 -1.0, %v74_v23  ;;  %v1053_v27 = vadd.f32 -1.0, %v75_v25 }
  0x3d   :  { %v102_v10 = vrot.slane %v1499_v9, %v84_v8  ;;  %v78_v26 = vmul.f32 1e+09, %v1052_v24  ;;  %v79_v29 = vmul.f32 1e+09, %v1053_v27 }
  0x3e   :  { %1120 = vmatpush3.bf16.msra.mxu0 %v1228_v2 }
  0x3f   :  { %1131 = vmatprep.subr.bf16.mxu0 %v1368_v0  ;;  %v1526_v28 = vrot.slane %v78_v26, %v84_v8  ;;  %v1529_v33 = vrot.slane %v79_v29, %v84_v8 }
  0x41   :  { %1122 = vmatmul.mubr.msk.bf16.vlgmr.msra.gmra.mrb[0].mxu0 %vm115_vm1, %v94_v5 }
  0x42   :  { %1133 = vmatprep.mubr.msk.bf16.mxu0 %vm1369_vm0, %v1368_v0 }
 0x114   :  { %v153_v11 = vpop.f32.mrb[0].mxu0 }
 0x115   :  { %v154_v12 = vadd.f32 %v153_v11, %v102_v10  ;;  %v1123_v13 = vpop.f32.mrb[1].mxu0 }
 0x116   :  { %v156_v14 = vpop.f32.mrb[2].mxu0 }
 0x117   :  { %v1502_v15 = vpack.c.bf16 %v154_v12, %v154_v12  ;;  %v157_v16 = vadd.f32 %v156_v14, %v102_v10  ;;  %v1124_v17 = vpop.f32.mrb[3].mxu0 }
 0x119   :  { %163 = vrot.lane.b32.xlu0 %v1502_v15, %s1370_s0  ;;  %v1505_v18 = vpack.c.bf16 %v157_v16, %v157_v16 }
 0x11d   :  { %213 = vrot.lane.b32.xlu0 %v1505_v18, %s1370_s0 }
 0x18b   :  { %v164_v19 = vpop.permute.xlu0 %163 }
 0x18c   :  { %v170_v20 = vsel %vm165_vm2, %v164_v19, 0 }
 0x18d   :  { %1126 = vmatpush3.bf16.xpose.msra.mxu1 %v170_v20 }
 0x18e   :  { %1137 = vmatprep.subr.bf16.mxu1 %v1368_v0 }
 0x18f   :  { %v214_v21 = vpop.permute.xlu0 %213 }
 0x190   :  { %v219_v22 = vsel %vm165_vm2, %v214_v21, 0 }
 0x191   :  { %1132 = vmatpush3.bf16.xpose.msra.mxu0 %v219_v22 }
 0x192   :  { %1143 = vmatprep.subr.bf16.mxu0 %v1368_v0 }
 0x194   :  { %1128 = vmatmul.mubr.msk.bf16.vlgmr.msra.gmra.mrb[0].mxu1 %vm165_vm2, %v1502_v15 }
 0x195   :  { %1139 = vmatprep.mubr.msk.bf16.mxu1 %vm1369_vm0, %v1368_v0 }
 0x198   :  { %1134 = vmatmul.mubr.msk.bf16.vlgmr.msra.gmra.mrb[4].mxu0 %vm165_vm2, %v1505_v18 }
 0x199   :  { %1145 = vmatprep.mubr.msk.bf16.mxu0 %vm1369_vm0, %v1368_v0 }
 0x267   :  { %v206_v30 = vpop.f32.mrb[0].mxu1 }
 0x268   :  { %v207_v31 = vadd.f32 %v206_v30, %v1526_v28  ;;  %v1129_v32 = vpop.f32.mrb[1].mxu1 }
 0x269   :  { %v209_v34 = vpop.f32.mrb[2].mxu1 }
 0x26a   :  { %v1130_v35 = vpop.f32.mrb[3].mxu1  ;;  %v262_v36 = vsel %vm261_vm3, %v207_v31, -inf }
 0x26b   :  { %263 = vmax.xlane.f32.xlu1 %v262_v36  ;;  %v255_v37 = vpop.f32.mrb[4].mxu0 }
 0x26c   :  { %v256_v38 = vadd.f32 %v255_v37, %v1529_v33  ;;  %v1135_v39 = vpop.f32.mrb[5].mxu0 }
 0x26d   :  { %v258_v40 = vpop.f32.mrb[6].mxu0 }
 0x26e   :  { %v1136_v41 = vpop.f32.mrb[7].mxu0  ;;  %v265_v42 = vsel %vm261_vm3, %v256_v38, -inf }
 0x26f   :  { %266 = vmax.xlane.f32.xlu1 %v265_v42 }
 0x280   :  { %286 = vrot.lane.b32.xlu1 %v1502_v15, %s1363_s17 }
 0x284   :  { %335 = vrot.lane.b32.xlu1 %v1505_v18, %s1363_s17  ;;  %s1372_s17 = smov 112  }
 0x288   :  { %388 = vrot.lane.b32.xlu1 %v1502_v15, %s1371_s1 }
 0x2f8   :  { %v264_v43 = vpop.xlane.xlu1 %263 }
 0x2f9   :  { %v268_v44 = vsub.f32 %v207_v31, %v264_v43 }
 0x2fb   :  { %v270_v45 = vmul.f32 1.442695, %v268_v44 }
 0x2fc   :  { %v267_v46 = vpop.xlane.xlu1 %266 }
 0x2fd   :  { %1239 = vpow2.f32 %v270_v45  ;;  %v269_v47 = vsub.f32 %v256_v38, %v267_v46 }
 0x2ff   :  { %v272_v48 = vmul.f32 1.442695, %v269_v47 }
 0x300   :  { %v287_v49 = vpop.permute.xlu1 %286 }
 0x301   :  { %1241 = vpow2.f32 %v272_v48  ;;  %v293_v50 = vsel %vm291_vm4, %v287_v49, 0 }
 0x302   :  { %1138 = vmatpush3.bf16.msra.mxu1 %v293_v50 }
 0x303   :  { %1149 = vmatprep.subr.bf16.mxu1 %v1368_v0 }
 0x304   :  { %v336_v51 = vpop.permute.xlu1 %335 }
 0x305   :  { %v341_v52 = vsel %vm291_vm4, %v336_v51, 0 }
 0x306   :  { %1144 = vmatpush3.bf16.msra.mxu0 %v341_v52 }
 0x307   :  { %v1240_v53 = vpop.eup %1239  ;;  %1155 = vmatprep.subr.bf16.mxu0 %v1368_v0 }
 0x308   :  { %v274_v54 = vsel %vm261_vm3, %v1240_v53, 0.0  ;;  %v389_v57 = vpop.permute.xlu1 %388 }
 0x309   :  { %275 = vadd.xlane.f32.xlu0 %v274_v54  ;;  %v394_v1 = vsel %vm165_vm2, %v389_v57, 0 }
 0x30b   :  { %v1242_v55 = vpop.eup %1241 }
 0x30c   :  { %v277_v56 = vsel %vm261_vm3, %v1242_v55, 0.0 }
 0x30d   :  { %278 = vadd.xlane.f32.xlu1 %v277_v56  ;;  %v1230_v56 = vld [vmem:[%s1660_s3 + $0x8] sm:$0xff]  }
 0x31e   :  { %438 = vrot.lane.b32.xlu1 %v1505_v18, %s1371_s1 }
 0x31f   :  { %386 = vrot.lane.b32.xlu0 %v1502_v15, %s1372_s17 }
 0x322   :  { %436 = vrot.lane.b32.xlu1 %v1505_v18, %s1372_s17 }
 0x396   :  { %v276_v58 = vpop.xlane.xlu0 %275 }
 0x397   :  { %1243 = vrcp.f32 %v276_v58 }
 0x39a   :  { %v279_v59 = vpop.xlane.xlu1 %278  ;;  %v387_v10 = vpop.permute.xlu0 %386 }
 0x39b   :  { %1245 = vrcp.f32 %v279_v59 }
 0x39e   :  { %v439_v5 = vpop.permute.xlu1 %438 }
 0x39f   :  { %v444_v8 = vsel %vm165_vm2, %v439_v5, 0 }
 0x3a1   :  { %v1244_v60 = vpop.eup %1243 }
 0x3a2   :  { %v282_v61 = vmul.f32 %v1244_v60, %v1240_v53  ;;  %v437_v11 = vpop.permute.xlu1 %436 }
 0x3a4   :  { %v284_v62 = vpack.c.bf16 %v282_v61, %v282_v61 }
 0x3a5   :  { %v1246_v63 = vpop.eup %1245 }
 0x3a6   :  { %v283_v2 = vmul.f32 %v1246_v63, %v1242_v55  ;;  %1140 = vmatmul.mubr.msk.bf16.vlgmr.msra.gmra.mrb[4].mxu1 %vm261_vm3, %v284_v62 }
 0x3a7   :  { %1150 = vmatpush3.bf16.xpose.msra.mxu1 %v394_v1  ;;  %1151 = vmatprep.mubr.msk.bf16.mxu1 %vm1369_vm0, %v1368_v0 }
 0x3a8   :  { %v285_v6 = vpack.c.bf16 %v283_v2, %v283_v2  ;;  %1161 = vmatprep.subr.bf16.mxu1 %v1368_v0 }
 0x3aa   :  { %1146 = vmatmul.mubr.msk.bf16.vlgmr.msra.gmra.mrb[8].mxu0 %vm261_vm3, %v285_v6 }
 0x3ab   :  { %1156 = vmatpush3.bf16.xpose.msra.mxu0 %v444_v8  ;;  %1157 = vmatprep.mubr.msk.bf16.mxu0 %vm1369_vm0, %v1368_v0 }
 0x3ac   :  { %1167 = vmatprep.subr.bf16.mxu0 %v1368_v0 }
 0x3ae   :  { %1152 = vmatmul.mubr.msk.bf16.vlgmr.msra.gmra.mrb[8].mxu1 %vm165_vm2, %v387_v10 }
 0x3af   :  { %1163 = vmatprep.mubr.msk.bf16.mxu1 %vm1369_vm0, %v1368_v0 }
 0x3b2   :  { %1158 = vmatmul.mubr.msk.bf16.vlgmr.msra.gmra.mrb[12].mxu0 %vm165_vm2, %v437_v11  ;;  %v712_v11 = vsub.s32 1, %v1496_v7 }
 0x3b3   :  { %1169 = vmatprep.mubr.msk.bf16.mxu0 %vm1369_vm0, %v1368_v0 }
 0x479   :  { %v1564_v12 = vpop.f32.mrb[4].mxu1 }
 0x47a   :  { %v1141_v13 = vpop.f32.mrb[5].mxu1 }
 0x47b   :  { %v332_v14 = vpop.f32.mrb[6].mxu1 }
 0x47c   :  { %v1142_v16 = vpop.f32.mrb[7].mxu1 }
 0x47d   :  { %v377_v17 = vpop.f32.mrb[8].mxu0 }
 0x47e   :  { %v383_v19 = vpack.c.bf16 %v377_v17, %v1564_v12  ;;  %v1147_v20 = vpop.f32.mrb[9].mxu0  ;;  %v713_v12 = vrot.slane %v1499_v9, %v712_v11 }
 0x47f   :  { %v380_v21 = vpop.f32.mrb[10].mxu0 }
 0x480   :  { %v1148_v22 = vpop.f32.mrb[11].mxu0 }
 0x481   :  { %v430_v23 = vpop.f32.mrb[8].mxu1 }
 0x482   :  { %v431_v24 = vadd.f32 %v430_v23, %v1526_v28  ;;  %v1153_v25 = vpop.f32.mrb[9].mxu1 }
 0x483   :  { %v433_v26 = vpop.f32.mrb[10].mxu1 }
 0x484   :  { %v1154_v27 = vpop.f32.mrb[11].mxu1  ;;  %v486_v29 = vsel %vm261_vm3, %v431_v24, -inf }
 0x485   :  { %487 = vmax.xlane.f32.xlu1 %v486_v29  ;;  %v480_v30 = vpop.f32.mrb[12].mxu0 }
 0x486   :  { %v481_v31 = vadd.f32 %v480_v30, %v1529_v33  ;;  %v1159_v32 = vpop.f32.mrb[13].mxu0 }
 0x487   :  { %v483_v34 = vpop.f32.mrb[14].mxu0 }
 0x488   :  { %v1160_v35 = vpop.f32.mrb[15].mxu0  ;;  %v489_v36 = vsel %vm261_vm3, %v481_v31, -inf }
 0x489   :  { %490 = vmax.xlane.f32.xlu0 %v489_v36 }
 0x49f   :  { %558 = vrot.lane.b32.xlu0 %v1505_v18, %s1373_s10 }
 0x512   :  { %v488_v37 = vpop.xlane.xlu1 %487 }
 0x513   :  { %v492_v28 = vsub.f32 %v431_v24, %v488_v37 }
 0x515   :  { %v494_v38 = vmul.f32 1.442695, %v492_v28  ;;  %v1231_v28 = vld [vmem:[#allocation2] sm:$0xff]  }
 0x516   :  { %v491_v39 = vpop.xlane.xlu0 %490 }
 0x517   :  { %1247 = vpow2.f32 %v494_v38  ;;  %v493_v40 = vsub.f32 %v481_v31, %v491_v39 }
 0x519   :  { %v496_v41 = vmul.f32 1.442695, %v493_v40 }
 0x51a   :  { %v559_v42 = vpop.permute.xlu0 %558 }
 0x51b   :  { %1249 = vpow2.f32 %v496_v41  ;;  %v564_v33 = vsel %vm291_vm4, %v559_v42, 0 }
 0x51c   :  { %1168 = vmatpush3.bf16.msra.mxu0 %v564_v33 }
 0x51d   :  { %1179 = vmatprep.subr.bf16.mxu0 %v1368_v0 }
 0x521   :  { %v1248_v43 = vpop.eup %1247 }
 0x522   :  { %v498_v44 = vsel %vm261_vm3, %v1248_v43, 0.0 }
 0x523   :  { %499 = vadd.xlane.f32.xlu1 %v498_v44 }
 0x525   :  { %v1250_v45 = vpop.eup %1249 }
 0x526   :  { %v501_v18 = vsel %vm261_vm3, %v1250_v45, 0.0 }
 0x527   :  { %502 = vadd.xlane.f32.xlu1 %v501_v18 }
 0x538   :  { %510 = vrot.lane.b32.xlu1 %v1502_v15, %s1373_s10  ;;  %v1229_v15 = vld [vmem:[%s1660_s3] sm:$0xff]  }
 0x5b0   :  { %v500_v46 = vpop.xlane.xlu1 %499 }
 0x5b1   :  { %1251 = vrcp.f32 %v500_v46 }
 0x5b4   :  { %v503_v47 = vpop.xlane.xlu1 %502 }
 0x5b5   :  { %1253 = vrcp.f32 %v503_v47 }
 0x5b8   :  { %v511_v48 = vpop.permute.xlu1 %510 }
 0x5b9   :  { %v516_v49 = vsel %vm291_vm4, %v511_v48, 0 }
 0x5ba   :  { %1162 = vmatpush3.bf16.msra.mxu1 %v516_v49 }
 0x5bb   :  { %v1252_v50 = vpop.eup %1251  ;;  %1173 = vmatprep.subr.bf16.mxu1 %v1368_v0 }
 0x5bc   :  { %v506_v51 = vmul.f32 %v1252_v50, %v1248_v43  ;;  %v747_v43 = vsub.s32 2, %v1496_v7 }
 0x5be   :  { %v508_v52 = vpack.c.bf16 %v506_v51, %v506_v51  ;;  %v748_v44 = vrot.slane %v1499_v9, %v747_v43 }
 0x5bf   :  { %v1254_v53 = vpop.eup %1253 }
 0x5c0   :  { %v507_v54 = vmul.f32 %v1254_v53, %v1250_v45  ;;  %1164 = vmatmul.mubr.msk.bf16.vlgmr.msra.gmra.mrb[12].mxu1 %vm261_vm3, %v508_v52  ;;  %v753_v45 = vsub.s32 3, %v1496_v7 }
 0x5c1   :  { %1175 = vmatprep.mubr.msk.bf16.mxu1 %vm1369_vm0, %v1368_v0  ;;  %1174 = vmatpush3.bf16.msra.mxu1 %v1230_v56  ;;  %v1235_v56 = vld [vmem:[%s1662_s5 + $0x10] sm:$0xff]  }
 0x5c2   :  { %v509_v55 = vpack.c.bf16 %v507_v54, %v507_v54  ;;  %1185 = vmatprep.subr.bf16.mxu1 %v1368_v0  ;;  %v754_v50 = vrot.slane %v1499_v9, %v753_v45 }
 0x5c4   :  { %1170 = vmatmul.mubr.msk.bf16.vlgmr.msra.gmra.mrb[16].mxu0 %vm261_vm3, %v509_v55  ;;  %v1234_v55 = vld [vmem:[%s1662_s5 + $0x8] sm:$0xff]  }
 0x5c5   :  { %1180 = vmatpush3.bf16.msra.mxu0 %v1229_v15  ;;  %1181 = vmatprep.mubr.msk.bf16.mxu0 %vm1369_vm0, %v1368_v0  ;;  %v1233_v15 = vld [vmem:[%s1662_s5] sm:$0xff]  }
 0x5c6   :  { %1193 = vmatprep.subr.bf16.mxu0 %v1368_v0 }
 0x5cc   :  { %1182 = vmatmul.mubr.msk.bf16.vlgmr.msra.gmra.mrb[20].mxu0 %vm165_vm2, %v383_v19 }
 0x5cd   :  { %1201 = vmatprep.mubr.msk.bf16.mxu0 %vm1369_vm0, %v1368_v0  ;;  %1194 = vmatpush3.bf16.msra.mxu0 %v1233_v15  ;;  %v952_v15 = vsub.s32 6, %v1496_v7 }
 0x5ce   :  { %1195 = vmatprep.subr.bf16.mxu0 %v1368_v0 }
 0x5d1   :  { %1196 = vmatpush3.bf16.msra.mxu0 %v1234_v55  ;;  %v958_v55 = vsub.s32 7, %v1496_v7 }
 0x5d2   :  { %1197 = vmatprep.subr.bf16.mxu0 %v1368_v0 }
 0x5d5   :  { %1198 = vmatpush3.bf16.msra.mxu0 %v1235_v56  ;;  %v953_v56 = vrot.slane %v1499_v9, %v952_v15 }
 0x5d6   :  { %1199 = vmatprep.subr.bf16.mxu0 %v1368_v0 }
 0x693   :  { %v552_v57 = vpop.f32.mrb[12].mxu1 }
 0x694   :  { %v1165_v58 = vpop.f32.mrb[13].mxu1 }
 0x695   :  { %v555_v59 = vpop.f32.mrb[14].mxu1  ;;  %v764_v58 = vsub.s32 4, %v1496_v7 }
 0x696   :  { %v1166_v60 = vpop.f32.mrb[15].mxu1 }
 0x697   :  { %v600_v61 = vpop.f32.mrb[16].mxu0  ;;  %v765_v59 = vrot.slane %v1499_v9, %v764_v58  ;;  %v959_v58 = vrot.slane %v1499_v9, %v958_v55 }
 0x698   :  { %v606_v62 = vpack.c.bf16 %v600_v61, %v552_v57  ;;  %v1171_v63 = vpop.f32.mrb[17].mxu0  ;;  %v1236_v57 = vld [vmem:[%s1662_s5 + $0x18] sm:$0xff]   ;;  %s1374_s5 = smov [#allocation8]  }
 0x699   :  { %v603_v1 = vpop.f32.mrb[18].mxu0  ;;  %1200 = vmatpush3.bf16.msra.mxu0 %v1236_v57  ;;  %s1042_s21 = sshll.u32 %s1374_s5, 4  ;;  %s1043_s21 = int_to_ptr.vmem [resolvable:$true] %s1042_s21 }
 0x69a   :  { %v1172_v2 = vpop.f32.mrb[19].mxu0  ;;  %1176 = vmatmul.mubr.msk.bf16.vlgmr.msra.gmra.mrb[16].mxu1 %vm165_vm2, %v606_v62  ;;  %s1333_s22 = scalar_lea.vmem %s1043_s21, 32  ;;  %p1338_p11 = scmp.lt.s32.totalorder %s1043_s21, %s1043_s21 }
 0x69b   :  { %1189 = vmatprep.mubr.msk.bf16.mxu1 %vm1369_vm0, %v1368_v0  ;;  %1186 = vmatpush3.bf16.msra.mxu1 %v1231_v28  ;;  %p1334_p10 = scmp.ne.s32.totalorder %s1043_s21, %s1333_s22  ;;  %p1339_p12 = scmp.lt.s32.totalorder %s1333_s22, %s1333_s22 }
 0x69c   :  { %1187 = vmatprep.subr.bf16.mxu1 %v1368_v0 }
 0x69d   :  { %p1340_p13 = por %p1339_p12, %p1338_p11 }
 0x69f   :  { %v703_v5 = vpop.f32.mrb[20].mxu0  ;;  %p1341_p0 = pnand %p1340_p13, %p1334_p10 }
 0x6a0   :  { %v1183_v6 = vpop.f32.mrb[21].mxu0 }
 0x6a1   :  { %v706_v8 = vpop.f32.mrb[22].mxu0 }
 0x6a2   :  { %v1184_v10 = vpop.f32.mrb[23].mxu0 }
 0x76d   :  { %v653_v13 = vpop.f32.mrb[16].mxu1 }
 0x76e   :  { %v704_v14 = vadd.f32 %v703_v5, %v653_v13  ;;  %v1177_v16 = vpop.f32.mrb[17].mxu1 }
 0x76f   :  { %v656_v17 = vpop.f32.mrb[18].mxu1 }
 0x770   :  { %v714_v19 = vadd.f32 %v713_v12, %v704_v14  ;;  %v707_v20 = vadd.f32 %v706_v8, %v656_v17  ;;  %v1178_v21 = vpop.f32.mrb[19].mxu1 }
 0x772   :  { %v715_v22 = vadd.f32 %v713_v12, %v707_v20  ;;  %v716_v23 = vadd.f32 %v714_v19, %v1482_v3 }
 0x774   :  { %v718_v24 = vsel %vm115_vm1, %v716_v23, 0.0  ;;  %v717_v25 = vadd.f32 %v715_v22, %v1487_v4  ;;  %v1232_v4 = vld [vmem:[#allocation2 + $0x8] sm:$0xff]  }
 0x775   :  { %719 = vadd.xlane.f32.xlu1 %v718_v24  ;;  %1188 = vmatpush3.bf16.msra.mxu1 %v1232_v4 }
 0x776   :  { %v721_v26 = vsel %vm115_vm1, %v717_v25, 0.0  ;;  %1205 = vmatprep.subr.bf16.mxu1 %v1368_v0 }
 0x777   :  { %722 = vadd.xlane.f32.xlu0 %v721_v26 }
 0x802   :  { %v720_v27 = vpop.xlane.xlu1 %719 }
 0x803   :  { %v725_v29 = vmul.f32 0.03125, %v720_v27 }
 0x804   :  { %v723_v30 = vpop.xlane.xlu0 %722 }
 0x805   :  { %v727_v31 = vsub.f32 %v716_v23, %v725_v29  ;;  %v726_v32 = vmul.f32 0.03125, %v723_v30  ;;  %v851_v29 = vsub.s32 5, %v1496_v7 }
 0x807   :  { %v728_v34 = vsub.f32 %v717_v25, %v726_v32  ;;  %v729_v35 = vmul.f32 %v727_v31, %v727_v31  ;;  %v852_v30 = vrot.slane %v1499_v9, %v851_v29 }
 0x809   :  { %v731_v36 = vsel %vm115_vm1, %v729_v35, 0.0  ;;  %v730_v37 = vmul.f32 %v728_v34, %v728_v34 }
 0x80a   :  { %732 = vadd.xlane.f32.xlu1 %v731_v36 }
 0x80b   :  { %v734_v3 = vsel %vm115_vm1, %v730_v37, 0.0 }
 0x80c   :  { %735 = vadd.xlane.f32.xlu0 %v734_v3 }
 0x897   :  { %v733_v38 = vpop.xlane.xlu1 %732 }
 0x898   :  { %v737_v39 = vmul.f32 0.03125, %v733_v38 }
 0x899   :  { %v736_v40 = vpop.xlane.xlu0 %735 }
 0x89a   :  { %v739_v41 = vadd.f32 1e-12, %v737_v39  ;;  %v738_v42 = vmul.f32 0.03125, %v736_v40 }
 0x89c   :  { %1255 = vrsqrt.f32 %v739_v41  ;;  %v740_v33 = vadd.f32 1e-12, %v738_v42 }
 0x89e   :  { %1257 = vrsqrt.f32 %v740_v33 }
 0x8a6   :  { %v1256_v18 = vpop.eup %1255 }
 0x8a7   :  { %v743_v46 = vmul.f32 %v1256_v18, %v727_v31 }
 0x8a8   :  { %v1258_v47 = vpop.eup %1257 }
 0x8a9   :  { %v749_v48 = vmul.f32 %v748_v44, %v743_v46  ;;  %v744_v49 = vmul.f32 %v1258_v47, %v728_v34  ;;  %v1237_v47 = vld [vmem:[#allocation5] sm:$0xff]  }
 0x8ab   :  { %v750_v51 = vmul.f32 %v748_v44, %v744_v49  ;;  %v755_v52 = vadd.f32 %v754_v50, %v749_v48  ;;  %v1238_v48 = vld [vmem:[#allocation5 + $0x8] sm:$0xff]  }
 0x8ad   :  { %v756_v53 = vadd.f32 %v754_v50, %v750_v51 }
 0x8af   :  { %v757_v54 = vpack.c.bf16 %v756_v53, %v755_v52 }
 0x8b1   :  { %1190 = vmatmul.mubr.msk.bf16.vlgmr.msra.gmra.mrb[20].mxu1 %vm115_vm1, %v757_v54 }
 0x8b2   :  { %1209 = vmatprep.mubr.msk.bf16.mxu1 %vm1369_vm0, %v1368_v0  ;;  %1206 = vmatpush3.bf16.msra.mxu1 %v1237_v47 }
 0x8b3   :  { %1207 = vmatprep.subr.bf16.mxu1 %v1368_v0 }
 0x8b6   :  { %1208 = vmatpush3.bf16.msra.mxu1 %v1238_v48 }
 0x984   :  { %v815_v60 = vpop.f32.mrb[20].mxu1 }
 0x985   :  { %v816_v61 = vadd.f32 %v815_v60, %v765_v59  ;;  %v1191_v62 = vpop.f32.mrb[21].mxu1 }
 0x986   :  { %v818_v63 = vpop.f32.mrb[22].mxu1 }
 0x987   :  { %v822_v1 = vmul.f32 %v816_v61, %v816_v61  ;;  %v819_v2 = vadd.f32 %v818_v63, %v765_v59  ;;  %v1192_v5 = vpop.f32.mrb[23].mxu1 }
 0x989   :  { %v824_v6 = vmul.f32 %v822_v1, %v816_v61  ;;  %v823_v8 = vmul.f32 %v819_v2, %v819_v2 }
 0x98b   :  { %v826_v10 = vmul.f32 0.044715, %v824_v6  ;;  %v825_v11 = vmul.f32 %v823_v8, %v819_v2 }
 0x98d   :  { %v828_v12 = vadd.f32 %v826_v10, %v816_v61  ;;  %v827_v13 = vmul.f32 0.044715, %v825_v11 }
 0x98f   :  { %v830_v14 = vmul.f32 0.7978846, %v828_v12  ;;  %v829_v16 = vadd.f32 %v827_v13, %v819_v2  ;;  %v1079_v12 = vld [vmem:[#allocation7 + $0x8] ss:$0 sm:$0xff] }
 0x991   :  { %1259 = vtanh.f32 %v830_v14  ;;  %v831_v17 = vmul.f32 0.7978846, %v829_v16 }
 0x993   :  { %1261 = vtanh.f32 %v831_v17 }
 0x99b   :  { %v1260_v19 = vpop.eup %1259 }
 0x99c   :  { %v834_v20 = vadd.f32 1.0, %v1260_v19 }
 0x99d   :  { %v1262_v21 = vpop.eup %1261 }
 0x99e   :  { %v836_v22 = vmul.f32 0.5, %v834_v20  ;;  %v835_v23 = vadd.f32 1.0, %v1262_v21 }
 0x9a0   :  { %v837_v24 = vmul.f32 0.5, %v835_v23  ;;  %v838_v25 = vmul.f32 %v836_v22, %v816_v61 }
 0x9a2   :  { %v839_v26 = vmul.f32 %v837_v24, %v819_v2 }
 0x9a4   :  { %v840_v27 = vpack.c.bf16 %v839_v26, %v838_v25 }
 0x9a6   :  { %1202 = vmatmul.mubr.msk.bf16.vlgmr.msra.gmra.mrb[24].mxu0 %vm877_vm5, %v840_v27 }
 0xa79   :  { %v915_v31 = vpop.f32.mrb[24].mxu0 }
 0xa7a   :  { %v916_v32 = vadd.f32 %v915_v31, %v852_v30  ;;  %v1203_v34 = vpop.f32.mrb[25].mxu0 }
 0xa7b   :  { %v918_v35 = vpop.f32.mrb[26].mxu0 }
 0xa7c   :  { %v919_v36 = vadd.f32 %v918_v35, %v852_v30  ;;  %v1204_v37 = vpop.f32.mrb[27].mxu0  ;;  %v922_v3 = vadd.f32 %v916_v32, %v755_v52 }
 0xa7e   :  { %v924_v28 = vsel %vm115_vm1, %v922_v3, 0.0  ;;  %v923_v4 = vadd.f32 %v919_v36, %v756_v53 }
 0xa7f   :  { %925 = vadd.xlane.f32.xlu0 %v924_v28 }
 0xa80   :  { %v927_v38 = vsel %vm115_vm1, %v923_v4, 0.0 }
 0xa81   :  { %928 = vadd.xlane.f32.xlu1 %v927_v38 }
 0xb0c   :  { %v926_v39 = vpop.xlane.xlu0 %925 }
 0xb0d   :  { %v930_v40 = vmul.f32 0.03125, %v926_v39 }
 0xb0e   :  { %v929_v41 = vpop.xlane.xlu1 %928 }
 0xb0f   :  { %v932_v42 = vsub.f32 %v922_v3, %v930_v40  ;;  %v931_v33 = vmul.f32 0.03125, %v929_v41 }
 0xb11   :  { %v933_v43 = vsub.f32 %v923_v4, %v931_v33  ;;  %v934_v44 = vmul.f32 %v932_v42, %v932_v42 }
 0xb13   :  { %v936_v45 = vsel %vm115_vm1, %v934_v44, 0.0  ;;  %v935_v18 = vmul.f32 %v933_v43, %v933_v43 }
 0xb14   :  { %937 = vadd.xlane.f32.xlu0 %v936_v45 }
 0xb15   :  { %v939_v46 = vsel %vm115_vm1, %v935_v18, 0.0 }
 0xb16   :  { %940 = vadd.xlane.f32.xlu1 %v939_v46 }
 0xba1   :  { %v938_v49 = vpop.xlane.xlu0 %937 }
 0xba2   :  { %v942_v50 = vmul.f32 0.03125, %v938_v49 }
 0xba3   :  { %v941_v51 = vpop.xlane.xlu1 %940 }
 0xba4   :  { %v944_v52 = vadd.f32 1e-12, %v942_v50  ;;  %v943_v53 = vmul.f32 0.03125, %v941_v51 }
 0xba6   :  { %1263 = vrsqrt.f32 %v944_v52  ;;  %v945_v54 = vadd.f32 1e-12, %v943_v53 }
 0xba8   :  { %1265 = vrsqrt.f32 %v945_v54 }
 0xbb0   :  { %v1264_v57 = vpop.eup %1263 }
 0xbb1   :  { %v948_v59 = vmul.f32 %v1264_v57, %v932_v42 }
 0xbb2   :  { %v1266_v0 = vpop.eup %1265 }
 0xbb3   :  { %v954_v60 = vmul.f32 %v953_v56, %v948_v59  ;;  %v949_v61 = vmul.f32 %v1266_v0, %v933_v43 }
 0xbb5   :  { %v960_v62 = vadd.f32 %v959_v58, %v954_v60  ;;  %v955_v63 = vmul.f32 %v953_v56, %v949_v61 }
 0xbb7   :  { %v961_v1 = vadd.f32 %v959_v58, %v955_v63  ;;  %v962_v2 = vpack.c.bf16 %v960_v62, %v960_v62 }
 0xbb9   :  { %v963_v5 = vpack.c.bf16 %v961_v1, %v961_v1  ;;  %v974_v8 = vunpack.c.l.b16 %v962_v2 }
 0xbbb   :  { %v975_v6 = vunpack.c.l.b16 %v963_v5 }
 0xbbd   :  { %v976_v10 = vrot.slane %v975_v6, 7 }
 0xbbf   :  { %v978_v11 = vsel %vm977_vm6, %v976_v10, %v974_v8 }
 0xbc0   :  { %v979_v7 = vpack.c.b16 %v978_v11, %v978_v11 }
 0xbc2   :  { %1210 = vmatmul.mubr.msk.bf16.vlgmr.msra.gmra.mrb[24].mxu1 %vm115_vm1, %v979_v7 }
 0xc95   :  { %v1029_v9 = vpop.f32.mrb[24].mxu1 }
 0xc96   :  { %v1030_v13 = vadd.f32 %v1079_v12, %v1029_v9  ;;  %v1211_v14 = vpop.f32.mrb[25].mxu1 }
 0xc97   :  { %v1032_v16 = vpop.f32.mrb[26].mxu1 }
 0xc98   :  { %1035 = vst [vmem:[#allocation8] sm:$0x3] %v1030_v13  ;;  %v1212_v17 = vpop.f32.mrb[27].mxu1 }
 0xc99   :  { %1344 = shalt.err (!%p1341_p0)
}
 0xc9a   :  { %s1345_s24 = scalar_lea.hbm %s1665_s8, 32 }
 0xc9b   :  { %p1346_p1 = scmp.ne.s32.totalorder %s1665_s8, %s1345_s24  ;;  %p1349_p2 = scmp.lt.u32.totalorder %s1345_s24, %s1665_s8 }
 0xc9d   :  { %p1351_p3 = pnand %p1349_p2, %p1346_p1 }
 0xc9f   :  { %1354 = shalt.err (!%p1351_p3)
}
 0xca0   :  { %1045 = dma.vmem_to_hbm [thread:$0]  %s1043_s21, 32, %s1665_s8, [#allocation4]  }
 0xca1   :  { %1359 = dma.done.wait [#allocation4], 32  }
 0xca2   :  { %1360 = vsyncadd [#allocation4], 4294967264 }
 0xca3   :  { %1049 = vsyncpa [#allocation3], 1 }
 0xca4   :  { %1050 = vsyncpa [#allocation6], 1 }
 0xca5   :  { %1051 = vsyncpa [#allocation4], 1 }

</bundles_post_ra>
